<compile_context>
chip_gen: v7x
topology: tpu7x:2x2x1
jax: 0.10.0
libtpu: 0.0.40
codegen_flags: <defaults>
</compile_context>

<pallas_src>
import functools

import jax
import jax.numpy as jnp
from jax import lax
from jax.experimental import pallas as pl
from jax.experimental.pallas import tpu as pltpu


EPS = 1e-5
LANE = 128


def _round_up(x, m):
    return (x + m - 1) // m * m


def _vmem_capacity_bytes():
    try:
        cap = int(pltpu.get_tpu_info().vmem_capacity_bytes)
        if cap > 0:
            return cap
    except Exception:
        pass
    return 64 << 20  # conservative default (v7x per-TensorCore VMEM)


def _vmem_limit(need_bytes, cap_bytes):
    need = int(need_bytes) * 13 // 10 + (4 << 20)       # +30% and 4 MiB headroom
    return int(min(max(need, 32 << 20), cap_bytes * 3 // 4))


def _const_spec(shape, index_map):
    """BlockSpec for a grid-invariant operand: single-buffer it if supported."""
    try:
        return pl.BlockSpec(shape, index_map, pipeline_mode=pl.Buffered(1))
    except Exception:
        return pl.BlockSpec(shape, index_map)


# ---------------------------------------------------------------------------
# Kernels
# ---------------------------------------------------------------------------
def gated_attn_kernel(x_ref, wuv_ref, guv_ref, buv_ref, ww_ref, o_ref,
                      sums_ref, ss_ref, h_ref=None, *, inv_n, fh_pad, cache_h):
    """Two-phase gated attention.

    grid = (2, num_row_tiles); phase = program_id(0), tile = program_id(1).
      phase 0: h = x @ Wuv (bf16 in, f32 acc); accumulate per-column sum(h),
               sum(h^2); optionally cache h in VMEM; fuse BN into scale/shift.
      phase 1: normalize (fused affine), gate (sigmoid*tanh), reduce to the
               per-row score, emitted lane-dense as a (1, tile_n) block.
    """
    phase = pl.program_id(0)
    tile = pl.program_id(1)
    nt = pl.num_programs(1)

    @pl.when(jnp.logical_and(phase == 0, tile == 0))
    def _init():
        sums_ref[...] = jnp.zeros_like(sums_ref)

    @pl.when(phase == 0)
    def _stats():
        h = jnp.dot(x_ref[...], wuv_ref[...], preferred_element_type=jnp.float32)
        if cache_h:
            h_ref[tile] = h                               # keep h VMEM-resident
        # Zero-padded rows of x give h == 0, so they add nothing to the sums.
        sums_ref[0:1, :] += jnp.sum(h, axis=0, keepdims=True)
        sums_ref[1:2, :] += jnp.sum(h * h, axis=0, keepdims=True)

    @pl.when(jnp.logical_and(phase == 0, tile == nt - 1))
    def _finalize_stats():
        mean = sums_ref[0:1, :] * inv_n                   # biased (train) stats
        var = jnp.maximum(sums_ref[1:2, :] * inv_n - mean * mean, 0.0)
        scale = lax.rsqrt(var + EPS) * guv_ref[...]
        ss_ref[0:1, :] = scale
        ss_ref[1:2, :] = buv_ref[...] - mean * scale

    @pl.when(phase == 1)
    def _normalize_gate():
        if cache_h:
            h = h_ref[tile]                               # no second x read
        else:
            # fallback: recompute h (fh << fin -> recompute beats HBM scratch)
            h = jnp.dot(x_ref[...], wuv_ref[...],
                        preferred_element_type=jnp.float32)
        hn = h * ss_ref[0:1, :] + ss_ref[1:2, :]          # fused BN affine
        # sigmoid(x) == 0.5*(tanh(0.5x)+1): one EUP push per branch.
        u = 0.5 * (jnp.tanh(0.5 * hn[:, :fh_pad]) + 1.0)  # U branch
        v = jnp.tanh(hn[:, fh_pad:])                      # V branch
        gated = u * v                                     # [T, fh_pad]
        # Final Linear(fh, 1, bias=False), lane-dense: [1,fh] x [T,fh] -> [1,T]
        # (padded lanes of ww are zero, so they drop out of the contraction).
        o_ref[...] = lax.dot_general(
            ww_ref[...], gated, (((1,), (1,)), ((), ())),
            preferred_element_type=jnp.float32)


def nogate_attn_kernel(x_ref, w1_ref, b1_ref, w2_ref, b2_ref, o_ref):
    """w = Linear(tanh(Linear(x))) -> lane-dense (1, tile_n) scores."""
    h = jnp.tanh(jnp.dot(x_ref[...], w1_ref[...],
                         preferred_element_type=jnp.float32) + b1_ref[...])
    o_ref[...] = lax.dot_general(
        w2_ref[...], h, (((1,), (1,)), ((), ())),
        preferred_element_type=jnp.float32) + b2_ref[...]


# ---------------------------------------------------------------------------
# Wrapper
# ---------------------------------------------------------------------------
@functools.partial(jax.jit, static_argnames=("gating", "tile_n", "cache_h"))
def attention_module(params, x, gating=1, tile_n=None, cache_h=None):
    n, fin = x.shape
    fh = params["wu"].shape[0]
    fh_pad = _round_up(fh, LANE)
    fh2 = 2 * fh_pad
    cap = _vmem_capacity_bytes()

    # ---- row tiling -------------------------------------------------------
    n8 = _round_up(n, 8)
    if tile_n is None:
        if n8 <= 1024:
            tile_n = n8                                    # single tile
        else:
            budget = cap // 4                              # for streamed x tiles
            t = budget // max(2 * 2 * fin, 1)              # bf16, double-buffered
            tile_n = max(LANE, min(2048, (t // LANE) * LANE))
    assert tile_n % 8 == 0, "row tile must be a multiple of 8 sublanes"
    n_pad = _round_up(n, tile_n)
    nt = n_pad // tile_n
    assert nt == 1 or tile_n % LANE == 0, \
        "multi-tile runs need a lane-aligned row tile (multiple of 128)"

    x_p = x.astype(jnp.bfloat16)                           # halve x HBM bytes
    if n_pad != n:
        x_p = jnp.pad(x_p, ((0, n_pad - n), (0, 0)))       # zero rows

    def pad_cols(a, width):
        return jnp.pad(a, ((0, 0), (0, width - a.shape[1])))

    if gating == 1:
        if cache_h is None:                                # keep h VMEM-resident?
            cache_h = n_pad * fh2 * 4 <= max(cap // 8, 8 << 20)

        # Fuse U and V, pre-transpose to [fin, 2*fh_pad], pad hidden to 128.
        wuv = jnp.concatenate([pad_cols(params["wu"].T, fh_pad),
                               pad_cols(params["wv"].T, fh_pad)],
                              axis=1).astype(jnp.bfloat16)
        guv = jnp.concatenate([pad_cols(params["gu"], fh_pad),
                               pad_cols(params["gv"], fh_pad)], axis=1)
        buv = jnp.concatenate([pad_cols(params["bu"], fh_pad),
                               pad_cols(params["bv"], fh_pad)], axis=1)
        ww = pad_cols(params["ww"], fh_pad)                # [1, fh_pad]

        need = (2 * tile_n * fin * 2 + fin * fh2 * 2 + 2 * 2 * fh2 * 4
                + fh_pad * 4 + 2 * tile_n * 4 + 2 * 2 * fh2 * 4)
        scratch = [pltpu.VMEM((2, fh2), jnp.float32),      # Σh, Σh²
                   pltpu.VMEM((2, fh2), jnp.float32)]      # scale, shift
        if cache_h:
            need += n_pad * fh2 * 4
            scratch.append(pltpu.VMEM((nt, tile_n, fh2), jnp.float32))

        # When h is cached, phase 1 collapses x to block 0 -> its DMA dedupes.
        x_index = ((lambda p, i: (i * (1 - p), 0)) if cache_h
                   else (lambda p, i: (i, 0)))

        kernel = functools.partial(gated_attn_kernel, inv_n=1.0 / n,
                                   fh_pad=fh_pad, cache_h=cache_h)
        out = pl.pallas_call(
            kernel,
            out_shape=jax.ShapeDtypeStruct((1, n_pad), jnp.float32),
            grid_spec=pltpu.PrefetchScalarGridSpec(
                num_scalar_prefetch=0,
                grid=(2, nt),                              # (phase, row-tile)
                in_specs=[
                    pl.BlockSpec((tile_n, fin), x_index),               # x
                    _const_spec((fin, fh2), lambda p, i: (0, 0)),       # Wuv
                    _const_spec((1, fh2), lambda p, i: (0, 0)),         # gamma
                    _const_spec((1, fh2), lambda p, i: (0, 0)),         # beta
                    _const_spec((1, fh_pad), lambda p, i: (0, 0)),      # ww
                ],
                # Phase 0 stays pinned to block (0,0) -> no garbage writebacks.
                out_specs=pl.BlockSpec((1, tile_n), lambda p, i: (0, i * p)),
                scratch_shapes=scratch,
            ),
            compiler_params=pltpu.CompilerParams(
                dimension_semantics=("arbitrary", "arbitrary"),
                vmem_limit_bytes=_vmem_limit(need, cap)),
        )(x_p, wuv, guv, buv, ww)
    else:
        w1 = pad_cols(params["w1"].T, fh_pad).astype(jnp.bfloat16)
        b1 = pad_cols(params["b1"], fh_pad)
        w2 = pad_cols(params["w2"], fh_pad)                # [1, fh_pad]
        b2 = params["b2"]                                  # [1, 1]
        need = (2 * tile_n * fin * 2 + fin * fh_pad * 2 + 2 * fh_pad * 4 * 2
                + 2 * tile_n * 4 + 4)
        out = pl.pallas_call(
            nogate_attn_kernel,
            out_shape=jax.ShapeDtypeStruct((1, n_pad), jnp.float32),
            grid_spec=pltpu.PrefetchScalarGridSpec(
                num_scalar_prefetch=0,
                grid=(nt,),
                in_specs=[
                    pl.BlockSpec((tile_n, fin), lambda i: (i, 0)),
                    _const_spec((fin, fh_pad), lambda i: (0, 0)),
                    _const_spec((1, fh_pad), lambda i: (0, 0)),
                    _const_spec((1, fh_pad), lambda i: (0, 0)),
                    _const_spec((1, 1), lambda i: (0, 0)),
                ],
                out_specs=pl.BlockSpec((1, tile_n), lambda i: (0, i)),
            ),
            compiler_params=pltpu.CompilerParams(
                dimension_semantics=("parallel",),
                vmem_limit_bytes=_vmem_limit(need, cap)),
        )(x_p, w1, b1, w2, b2)

    return out[0, :n][:, None]                             # -> [N, 1]


# ---------------------------------------------------------------------------
# Params + pure-JAX reference
# ---------------------------------------------------------------------------
def make_params(fin, fhidden, key):
    ks = jax.random.split(key, 8)
    return {
        # U branch: Linear(fin, fhidden, bias=False) + BatchNorm1d(fhidden)
        "wu": jax.random.normal(ks[0], (fhidden, fin), jnp.float32) * 0.1,
        "gu": jax.random.normal(ks[1], (1, fhidden), jnp.float32) * 0.1 + 1.0,
        "bu": jax.random.normal(ks[2], (1, fhidden), jnp.float32) * 0.1,
        # V branch
        "wv": jax.random.normal(ks[3], (fhidden, fin), jnp.float32) * 0.1,
        "gv": jax.random.normal(ks[4], (1, fhidden), jnp.float32) * 0.1 + 1.0,
        "bv": jax.random.normal(ks[5], (1, fhidden), jnp.float32) * 0.1,
        # final w: Linear(fhidden, 1, bias=False)
        "ww": jax.random.normal(ks[6], (1, fhidden), jnp.float32) * 0.1,
        # attention_no_gating: Linear(fin, fhidden) -> Tanh -> Linear(fhidden,1)
        "w1": jax.random.normal(ks[7], (fhidden, fin), jnp.float32) * 0.1,
        "b1": jax.random.normal(ks[1], (1, fhidden), jnp.float32) * 0.1,
        "w2": jax.random.normal(ks[0], (1, fhidden), jnp.float32) * 0.1,
        "b2": jax.random.normal(ks[2], (1, 1), jnp.float32) * 0.1,
    }


def _bn_train(h, gamma, beta):
    mean = jnp.mean(h, axis=0, keepdims=True)
    var = jnp.mean((h - mean) ** 2, axis=0, keepdims=True)
    return (h - mean) * lax.rsqrt(var + EPS) * gamma + beta


def _reference(params, x, gating=1, matmul_dtype=jnp.float32):
    """Torch-equivalent forward; matmul_dtype=bf16 mirrors the kernel's casts."""
    def mm(a, w_t):   # a @ w_t with f32 accumulation, inputs cast to matmul_dtype
        return jnp.dot(a.astype(matmul_dtype), w_t.astype(matmul_dtype),
                       preferred_element_type=jnp.float32)

    if gating == 1:
        hu = mm(x, params["wu"].T)
        hv = mm(x, params["wv"].T)
        u = jax.nn.sigmoid(_bn_train(hu, params["gu"], params["bu"]))
        v = jnp.tanh(_bn_train(hv, params["gv"], params["bv"]))
        return (u * v) @ params["ww"].T
    h = jnp.tanh(mm(x, params["w1"].T) + params["b1"])
    return h @ params["w2"].T + params["b2"]


if __name__ == "__main__":
    fin, fhidden = 32, 16
    key = jax.random.PRNGKey(0)
    kp, kx1, kx2 = jax.random.split(key, 3)
    params = make_params(fin, fhidden, kp)

    # single-tile path (20 rows -> padded to 24), cached-h and recompute paths
    x_small = jax.random.normal(kx1, (20, fin), jnp.float32)
    out_g_small = attention_module(params, x_small, gating=1)
    out_g_small_nc = attention_module(params, x_small, gating=1, cache_h=False)
    out_n_small = attention_module(params, x_small, gating=0)

    # multi-tile path (300 rows, 128-row tiles -> 3 tiles + zero-row padding)
    x_big = jax.random.normal(kx2, (300, fin), jnp.float32)
    out_g_big = attention_module(params, x_big, gating=1, tile_n=128)
    out_n_big = attention_module(params, x_big, gating=0, tile_n=128)

    jax.block_until_ready((out_g_small, out_g_small_nc, out_n_small,
                           out_g_big, out_n_big))

    checks = [(out_g_small, x_small, 1), (out_g_small_nc, x_small, 1),
              (out_n_small, x_small, 0), (out_g_big, x_big, 1),
              (out_n_big, x_big, 0)]
    for out, xx, g in checks:
        assert out.shape == (xx.shape[0], 1)
        # tight check vs a reference that mirrors the bf16 input casts
        ref_bf = _reference(params, xx, gating=g, matmul_dtype=jnp.bfloat16)
        err_bf = float(jnp.max(jnp.abs(out - ref_bf)))
        assert err_bf < 2e-3, (g, "bf16-ref", err_bf)
        # loose check vs the exact f32 torch-equivalent reference
        ref_f32 = _reference(params, xx, gating=g, matmul_dtype=jnp.float32)
        err_f32 = float(jnp.max(jnp.abs(out - ref_f32)))
        assert err_f32 < 6e-2, (g, "f32-ref", err_f32)
    print("KERNEL_OK")
</pallas_src>

<mosaic_0001>
module attributes {stable_mosaic.version = 11 : i64} {
  func.func @gated_attn_kernel(%arg0: i32, %arg1: i32, %arg2: memref<24x32xbf16, #tpu.memory_space<vmem>>, %arg3: memref<32x256xbf16, #tpu.memory_space<vmem>>, %arg4: memref<1x256xf32, #tpu.memory_space<vmem>>, %arg5: memref<1x256xf32, #tpu.memory_space<vmem>>, %arg6: memref<1x128xf32, #tpu.memory_space<vmem>>, %arg7: memref<1x24xf32, #tpu.memory_space<vmem>>, %arg8: memref<2x256xf32, #tpu.memory_space<vmem>>, %arg9: memref<2x256xf32, #tpu.memory_space<vmem>>, %arg10: memref<1x24x256xf32, #tpu.memory_space<vmem>>) attributes {dimension_semantics = [#tpu.dimension_semantics<arbitrary>, #tpu.dimension_semantics<arbitrary>], iteration_bounds = array<i64: 2, 1>, scalar_prefetch = 0 : i64, scratch_operands = 3 : i64, tpu.core_type = #tpu.core_type<tc>, window_params = [{transform_indices = @transform_0, window_bounds = array<i64: 24, 32>}, {pipeline_mode = #tpu.pipeline_mode<synchronous>, transform_indices = @transform_1, window_bounds = array<i64: 32, 256>}, {pipeline_mode = #tpu.pipeline_mode<synchronous>, transform_indices = @transform_2, window_bounds = array<i64: 1, 256>}, {pipeline_mode = #tpu.pipeline_mode<synchronous>, transform_indices = @transform_3, window_bounds = array<i64: 1, 256>}, {pipeline_mode = #tpu.pipeline_mode<synchronous>, transform_indices = @transform_4, window_bounds = array<i64: 1, 128>}, {transform_indices = @transform_5, window_bounds = array<i64: 1, 24>}]} {
    %c0_i32 = arith.constant 0 : i32
    %0 = arith.cmpi eq, %arg0, %c0_i32 : i32
    %c0_i32_0 = arith.constant 0 : i32
    %1 = arith.cmpi eq, %arg1, %c0_i32_0 : i32
    %2 = arith.andi %0, %1 : i1
    %3 = arith.extui %2 : i1 to i32
    %c0_i32_1 = arith.constant 0 : i32
    %4 = arith.cmpi ne, %3, %c0_i32_1 : i32
    scf.if %4 {
      %cst = arith.constant 0.000000e+00 : f32
      %16 = vector.broadcast %cst : f32 to vector<2x256xf32>
      %c0 = arith.constant 0 : index
      %c0_8 = arith.constant 0 : index
      %17 = vector.load %arg8[%c0, %c0_8] : memref<2x256xf32, #tpu.memory_space<vmem>>, vector<2x256xf32>
      tpu.vector_store %arg8[%c0, %c0_8], %16 {strides = array<i32>} : memref<2x256xf32, #tpu.memory_space<vmem>>, vector<2x256xf32>,
    } else {
    }
    %c0_i32_2 = arith.constant 0 : i32
    %5 = arith.cmpi eq, %arg0, %c0_i32_2 : i32
    %6 = arith.extui %5 : i1 to i32
    %c0_i32_3 = arith.constant 0 : i32
    %7 = arith.cmpi ne, %6, %c0_i32_3 : i32
    scf.if %7 {
      %c0 = arith.constant 0 : index
      %c0_8 = arith.constant 0 : index
      %16 = vector.load %arg2[%c0, %c0_8] : memref<24x32xbf16, #tpu.memory_space<vmem>>, vector<24x32xbf16>
      %c0_9 = arith.constant 0 : index
      %c0_10 = arith.constant 0 : index
      %17 = vector.load %arg3[%c0_9, %c0_10] : memref<32x256xbf16, #tpu.memory_space<vmem>>, vector<32x256xbf16>
      %cst = arith.constant dense<0.000000e+00> : vector<24x256xf32>
      %18 = tpu.matmul %16, %17, %cst {dimension_numbers = #tpu.dot_dimension_numbers<[1], [0], [0], [1], [0, 0, 1, 1], [], []>} : vector<24x32xbf16>, vector<32x256xbf16>, vector<24x256xf32> -> vector<24x256xf32>
      %19 = arith.index_cast %arg1 : i32 to index
      %c0_11 = arith.constant 0 : index
      %c0_12 = arith.constant 0 : index
      %20 = vector.load %arg10[%19, %c0_11, %c0_12] : memref<1x24x256xf32, #tpu.memory_space<vmem>>, vector<1x24x256xf32>
      %21 = vector.shape_cast %20 : vector<1x24x256xf32> to vector<24x256xf32>
      %22 = vector.shape_cast %18 : vector<24x256xf32> to vector<1x24x256xf32>
      tpu.vector_store %arg10[%19, %c0_11, %c0_12], %22 {strides = array<i32>} : memref<1x24x256xf32, #tpu.memory_space<vmem>>, vector<1x24x256xf32>,
      %c0_13 = arith.constant 0 : index
      %c0_14 = arith.constant 0 : index
      %23 = vector.load %arg8[%c0_13, %c0_14] : memref<2x256xf32, #tpu.memory_space<vmem>>, vector<1x256xf32>
      %cst_15 = arith.constant dense<0.000000e+00> : vector<256xf32>
      %24 = vector.multi_reduction <add>, %18, %cst_15 [0] : vector<24x256xf32> to vector<256xf32>
      %25 = vector.shape_cast %24 : vector<256xf32> to vector<1x256xf32>
      %26 = arith.addf %23, %25 : vector<1x256xf32>
      %c0_16 = arith.constant 0 : index
      %c0_17 = arith.constant 0 : index
      %27 = vector.load %arg8[%c0_16, %c0_17] : memref<2x256xf32, #tpu.memory_space<vmem>>, vector<1x256xf32>
      tpu.vector_store %arg8[%c0_16, %c0_17], %26 {strides = array<i32>} : memref<2x256xf32, #tpu.memory_space<vmem>>, vector<1x256xf32>,
      %c1 = arith.constant 1 : index
      %c0_18 = arith.constant 0 : index
      %28 = vector.load %arg8[%c1, %c0_18] : memref<2x256xf32, #tpu.memory_space<vmem>>, vector<1x256xf32>
      %29 = arith.mulf %18, %18 : vector<24x256xf32>
      %cst_19 = arith.constant dense<0.000000e+00> : vector<256xf32>
      %30 = vector.multi_reduction <add>, %29, %cst_19 [0] : vector<24x256xf32> to vector<256xf32>
      %31 = vector.shape_cast %30 : vector<256xf32> to vector<1x256xf32>
      %32 = arith.addf %28, %31 : vector<1x256xf32>
      %c1_20 = arith.constant 1 : index
      %c0_21 = arith.constant 0 : index
      %33 = vector.load %arg8[%c1_20, %c0_21] : memref<2x256xf32, #tpu.memory_space<vmem>>, vector<1x256xf32>
      tpu.vector_store %arg8[%c1_20, %c0_21], %32 {strides = array<i32>} : memref<2x256xf32, #tpu.memory_space<vmem>>, vector<1x256xf32>,
    } else {
    }
    %c0_i32_4 = arith.constant 0 : i32
    %8 = arith.cmpi eq, %arg0, %c0_i32_4 : i32
    %c0_i32_5 = arith.constant 0 : i32
    %9 = arith.cmpi eq, %arg1, %c0_i32_5 : i32
    %10 = arith.andi %8, %9 : i1
    %11 = arith.extui %10 : i1 to i32
    %c0_i32_6 = arith.constant 0 : i32
    %12 = arith.cmpi ne, %11, %c0_i32_6 : i32
    scf.if %12 {
      %c0 = arith.constant 0 : index
      %c0_8 = arith.constant 0 : index
      %16 = vector.load %arg8[%c0, %c0_8] : memref<2x256xf32, #tpu.memory_space<vmem>>, vector<1x256xf32>
      %cst = arith.constant 5.000000e-02 : f32
      %17 = vector.broadcast %cst : f32 to vector<1x256xf32>
      %18 = arith.mulf %16, %17 : vector<1x256xf32>
      %c1 = arith.constant 1 : index
      %c0_9 = arith.constant 0 : index
      %19 = vector.load %arg8[%c1, %c0_9] : memref<2x256xf32, #tpu.memory_space<vmem>>, vector<1x256xf32>
      %cst_10 = arith.constant 5.000000e-02 : f32
      %20 = vector.broadcast %cst_10 : f32 to vector<1x256xf32>
      %21 = arith.mulf %19, %20 : vector<1x256xf32>
      %22 = arith.mulf %18, %18 : vector<1x256xf32>
      %23 = arith.subf %21, %22 : vector<1x256xf32>
      %cst_11 = arith.constant 0.000000e+00 : f32
      %24 = vector.broadcast %cst_11 : f32 to vector<1x256xf32>
      %25 = arith.maximumf %23, %24 : vector<1x256xf32>
      %cst_12 = arith.constant 9.99999974E-6 : f32
      %26 = vector.broadcast %cst_12 : f32 to vector<1x256xf32>
      %27 = arith.addf %25, %26 : vector<1x256xf32>
      %28 = math.rsqrt %27 : vector<1x256xf32>
      %c0_13 = arith.constant 0 : index
      %c0_14 = arith.constant 0 : index
      %29 = vector.load %arg4[%c0_13, %c0_14] : memref<1x256xf32, #tpu.memory_space<vmem>>, vector<1x256xf32>
      %30 = arith.mulf %28, %29 : vector<1x256xf32>
      %c0_15 = arith.constant 0 : index
      %c0_16 = arith.constant 0 : index
      %31 = vector.load %arg9[%c0_15, %c0_16] : memref<2x256xf32, #tpu.memory_space<vmem>>, vector<1x256xf32>
      tpu.vector_store %arg9[%c0_15, %c0_16], %30 {strides = array<i32>} : memref<2x256xf32, #tpu.memory_space<vmem>>, vector<1x256xf32>,
      %c0_17 = arith.constant 0 : index
      %c0_18 = arith.constant 0 : index
      %32 = vector.load %arg5[%c0_17, %c0_18] : memref<1x256xf32, #tpu.memory_space<vmem>>, vector<1x256xf32>
      %33 = arith.mulf %18, %30 : vector<1x256xf32>
      %34 = arith.subf %32, %33 : vector<1x256xf32>
      %c1_19 = arith.constant 1 : index
      %c0_20 = arith.constant 0 : index
      %35 = vector.load %arg9[%c1_19, %c0_20] : memref<2x256xf32, #tpu.memory_space<vmem>>, vector<1x256xf32>
      tpu.vector_store %arg9[%c1_19, %c0_20], %34 {strides = array<i32>} : memref<2x256xf32, #tpu.memory_space<vmem>>, vector<1x256xf32>,
    } else {
    }
    %c1_i32 = arith.constant 1 : i32
    %13 = arith.cmpi eq, %arg0, %c1_i32 : i32
    %14 = arith.extui %13 : i1 to i32
    %c0_i32_7 = arith.constant 0 : i32
    %15 = arith.cmpi ne, %14, %c0_i32_7 : i32
    scf.if %15 {
      %16 = arith.index_cast %arg1 : i32 to index
      %c0 = arith.constant 0 : index
      %c0_8 = arith.constant 0 : index
      %17 = vector.load %arg10[%16, %c0, %c0_8] : memref<1x24x256xf32, #tpu.memory_space<vmem>>, vector<1x24x256xf32>
      %18 = vector.shape_cast %17 : vector<1x24x256xf32> to vector<24x256xf32>
      %c0_9 = arith.constant 0 : index
      %c0_10 = arith.constant 0 : index
      %19 = vector.load %arg9[%c0_9, %c0_10] : memref<2x256xf32, #tpu.memory_space<vmem>>, vector<1x256xf32>
      %20 = vector.broadcast %19 : vector<1x256xf32> to vector<24x256xf32>
      %21 = arith.mulf %18, %20 : vector<24x256xf32>
      %c1 = arith.constant 1 : index
      %c0_11 = arith.constant 0 : index
      %22 = vector.load %arg9[%c1, %c0_11] : memref<2x256xf32, #tpu.memory_space<vmem>>, vector<1x256xf32>
      %23 = vector.broadcast %22 : vector<1x256xf32> to vector<24x256xf32>
      %24 = arith.addf %21, %23 : vector<24x256xf32>
      %25 = vector.extract_strided_slice %24 {offsets = [0, 0], sizes = [24, 128], strides = [1, 1]} : vector<24x256xf32> to vector<24x128xf32>
      %cst = arith.constant 5.000000e-01 : f32
      %26 = vector.broadcast %cst : f32 to vector<24x128xf32>
      %27 = arith.mulf %26, %25 : vector<24x128xf32>
      %28 = math.tanh %27 : vector<24x128xf32>
      %cst_12 = arith.constant 1.000000e+00 : f32
      %29 = vector.broadcast %cst_12 : f32 to vector<24x128xf32>
      %30 = arith.addf %28, %29 : vector<24x128xf32>
      %cst_13 = arith.constant 5.000000e-01 : f32
      %31 = vector.broadcast %cst_13 : f32 to vector<24x128xf32>
      %32 = arith.mulf %31, %30 : vector<24x128xf32>
      %33 = vector.extract_strided_slice %24 {offsets = [0, 128], sizes = [24, 128], strides = [1, 1]} : vector<24x256xf32> to vector<24x128xf32>
      %34 = math.tanh %33 : vector<24x128xf32>
      %35 = arith.mulf %32, %34 : vector<24x128xf32>
      %c0_14 = arith.constant 0 : index
      %c0_15 = arith.constant 0 : index
      %36 = vector.load %arg6[%c0_14, %c0_15] : memref<1x128xf32, #tpu.memory_space<vmem>>, vector<1x128xf32>
      %cst_16 = arith.constant dense<0.000000e+00> : vector<1x24xf32>
      %37 = tpu.matmul %36, %35, %cst_16 {dimension_numbers = #tpu.dot_dimension_numbers<[1], [1], [0], [0], [0, 0, 1, 0], [], []>} : vector<1x128xf32>, vector<24x128xf32>, vector<1x24xf32> -> vector<1x24xf32>
      %c0_17 = arith.constant 0 : index
      %c0_18 = arith.constant 0 : index
      %38 = vector.load %arg7[%c0_17, %c0_18] : memref<1x24xf32, #tpu.memory_space<vmem>>, vector<1x24xf32>
      tpu.vector_store %arg7[%c0_17, %c0_18], %37 {strides = array<i32>} : memref<1x24xf32, #tpu.memory_space<vmem>>, vector<1x24xf32>,
    } else {
    }
    return
  }
  func.func @transform_0(%arg0: i32, %arg1: i32) -> (i32, i32) {
    %c1_i32 = arith.constant 1 : i32
    %0 = arith.subi %c1_i32, %arg0 : i32
    %1 = arith.muli %arg1, %0 : i32
    %c0_i32 = arith.constant 0 : i32
    %c0_i32_0 = arith.constant 0 : i32
    return %1, %c0_i32 : i32, i32
  }
  func.func @transform_1(%arg0: i32, %arg1: i32) -> (i32, i32) {
    %c0_i32 = arith.constant 0 : i32
    %c0_i32_0 = arith.constant 0 : i32
    %c0_i32_1 = arith.constant 0 : i32
    return %c0_i32, %c0_i32_0 : i32, i32
  }
  func.func @transform_2(%arg0: i32, %arg1: i32) -> (i32, i32) {
    %c0_i32 = arith.constant 0 : i32
    %c0_i32_0 = arith.constant 0 : i32
    %c0_i32_1 = arith.constant 0 : i32
    return %c0_i32, %c0_i32_0 : i32, i32
  }
  func.func @transform_3(%arg0: i32, %arg1: i32) -> (i32, i32) {
    %c0_i32 = arith.constant 0 : i32
    %c0_i32_0 = arith.constant 0 : i32
    %c0_i32_1 = arith.constant 0 : i32
    return %c0_i32, %c0_i32_0 : i32, i32
  }
  func.func @transform_4(%arg0: i32, %arg1: i32) -> (i32, i32) {
    %c0_i32 = arith.constant 0 : i32
    %c0_i32_0 = arith.constant 0 : i32
    %c0_i32_1 = arith.constant 0 : i32
    return %c0_i32, %c0_i32_0 : i32, i32
  }
  func.func @transform_5(%arg0: i32, %arg1: i32) -> (i32, i32) {
    %0 = arith.muli %arg1, %arg0 : i32
    %c0_i32 = arith.constant 0 : i32
    %c0_i32_0 = arith.constant 0 : i32
    return %c0_i32, %0 : i32, i32
  }
}

</mosaic_0001>

<bundles_post_ra>
// kernel: attention_module.1
= control target key start
LH: loop header
LB: loop body
LE: loop exit
PB: predicated region body
PF: predicated region fallthrough
CT: control target
= control target key end

     0   :  { %s834_s18 = smov 0   ;;  %s836_s19 = smov 0   ;;  %s900_s0 = inlined_call_operand.vmem [shape: bf16[24,32], index: 0, kind: input, shape index: {}]   ;;  %s901_s1 = inlined_call_operand.vmem [shape: bf16[32,256], index: 1, kind: input, shape index: {}]   ;;  %s902_s2 = inlined_call_operand.vmem [shape: f32[1,256], index: 2, kind: input, shape index: {}]   ;;  %s903_s3 = inlined_call_operand.vmem [shape: f32[1,256], index: 3, kind: input, shape index: {}]   ;;  %s904_s4 = inlined_call_operand.vmem [shape: f32[1,128], index: 4, kind: input, shape index: {}]   ;;  %s905_s5 = inlined_call_operand.vmem [shape: f32[1,24], index: 5, kind: output, shape index: {}]  }
   0x1   :  { %s838_s20 = smov 0  }
   0x2 LB: > { %s27_s21 = sadd.s32 1, %s792_s19  ;;  %p685_p0 = scmp.ge.s32.totalorder %s796_s20, 1  ;;  %s796_s20 = sphi %s838_s20, %s15_s20   ;;  %s792_s19 = sphi %s836_s19, %s907_s19   ;;  %s788_s18 = sphi %s834_s18, %s906_s18  }
   0x3   : > { %p29_p1 = scmp.ge.s32.totalorder %s27_s21, 2  ;;  %p210_p2 = scmp.lt.s32.totalorder %s796_s20, 3 }
   0x5   : > { %s909_s21 = smov (%p29_p1, %s27_s21), 0  ;;  %p211_p3 = pnand %p685_p0, %p210_p2 }
   0x6   : > { %p255_p4 = scmp.eq.s32.totalorder (!%p211_p3), %s788_s18, 0 }
   0x7   : > { %214 = sbr.rel (%p211_p3) target bundleno = 566 (0x236), region = 40 }
   0xe   : > { %260 = sbr.rel (!%p255_p4) target bundleno = 21 (0x15), region = 44  ;;  %v798_v0 = vmov (%p255_p4), 0.0  }
   0xf   : > { %261 = vst [vmem:[#allocation2] sm:$0xf] (%p255_p4), %v798_v0 }
  0x15 PF: > { %p687_p5 = scmp.ne.s32.totalorder %s788_s18, 0 }
  0x16   : > { %v752_v1 = vld [vmem:[%s901_s1 + $0x4] ss:$8 sps:$4 sm:$0xff] (!%p687_p5)   ;;  %v754_v2 = vld [vmem:[%s901_s1] ss:$8 sps:$4 sm:$0xff] (!%p687_p5)   ;;  %v799_v3 = vmov (!%p687_p5), 0   ;;  %vm300_vm0 = vcmask (!%p687_p5), 261120   ;;  %v390_v37 = vlaneseq (!%p687_p5) }
  0x17   : > { %264 = sbr.rel (%p687_p5) target bundleno = 274 (0x112), region = 48  ;;  %339 = vmatprep.mubr.bf16.mxu0 (!%p687_p5), %v799_v3  ;;  %349 = vmatprep.mubr.bf16.mxu1 (!%p687_p5), %v799_v3  ;;  %v755_v4 = vld [vmem:[%s901_s1 + $0x14] ss:$8 sps:$4 sm:$0xff] (!%p687_p5)   ;;  %v757_v5 = vld [vmem:[%s901_s1 + $0x10] ss:$8 sps:$4 sm:$0xff] (!%p687_p5)   ;;  %v758_v6 = vld [vmem:[%s900_s0] sm:$0xff] (!%p687_p5)  }
  0x18   : > { %307 = vmatprep.subr.bf16.mxu0 (!%p687_p5), %v752_v1  ;;  %718 = vmatprep.subr.bf16.mxu1 (!%p687_p5), %v752_v1  ;;  %v759_v7 = vld [vmem:[%s900_s0 + $0x8] ss:$0 sps:$4 sm:$0xff] (!%p687_p5)   ;;  %v800_v35 = vmov (!%p687_p5), 1966171168   ;;  %v391_v47 = vshrl.u32 (!%p687_p5), %v390_v37, 7  ;;  %vm405_vm1 = vcmp.lt.s32.totalorder (!%p687_p5), %v390_v37, 256 }
  0x19   : > { %308 = vmatpush1.bf16.msra.mxu0 (!%p687_p5), %v754_v2  ;;  %720 = vmatpush1.bf16.msra.mxu1 (!%p687_p5), %v754_v2  ;;  %v388_v36 = vunpack.c.l.s4 (!%p687_p5), %v800_v35  ;;  %v367_v63 = vld [vmem:[#allocation2] ss:$2 sm:$0x3] (!%p687_p5)  ;;  %v409_v2 = vld [vmem:[#allocation2 + $0x1] ss:$2 sm:$0x3] (!%p687_p5) }
  0x1a   : > { %309 = vmatprep.subr.bf16.mxu0 (!%p687_p5), %v755_v4  ;;  %719 = vmatprep.subr.bf16.mxu1 (!%p687_p5), %v755_v4 }
  0x1b   : > { %v389_v46 = vunpack.c.0.s8 (!%p687_p5), %v388_v36 }
  0x1d   : > { %310 = vmatpush1.bf16.msra.mxu0 (!%p687_p5), %v757_v5  ;;  %721 = vmatpush1.bf16.msra.mxu1 (!%p687_p5), %v757_v5  ;;  %v392_v56 = vsub.s32 (!%p687_p5), %v389_v46, %v391_v47 }
  0x20   : > { %694 = vmatmul.mubr.msk.bf16.vlgmr.msra.gmra.mrb[0].mxu0 %vm300_vm0, %v758_v6  ;;  %695 = vmatmul.mubr.msk.bf16.vlgmr.msra.gmra.mrb[0].mxu1 %vm300_vm0, %v759_v7 }
  0xf3   : > { %v341_v8 = vpop.f32.mrb[0].mxu0  ;;  %v351_v9 = vpop.f32.mrb[0].mxu1 }
  0xf4   : > { %361 = vst [vmem:[#allocation4] sm:$0xff] %v341_v8  ;;  %v343_v10 = vpop.f32.mrb[1].mxu0  ;;  %365 = vst [vmem:[#allocation4 + $0x20] sm:$0xff] %v351_v9  ;;  %v353_v11 = vpop.f32.mrb[1].mxu1  ;;  %v410_v14 = vmul.f32 %v341_v8, %v341_v8  ;;  %v414_v15 = vmul.f32 %v351_v9, %v351_v9 }
  0xf5   : > { %362 = vst [vmem:[#allocation4 + $0x8] sm:$0xff] %v343_v10  ;;  %v345_v12 = vpop.f32.mrb[2].mxu0  ;;  %366 = vst [vmem:[#allocation4 + $0x28] sm:$0xff] %v353_v11  ;;  %v355_v13 = vpop.f32.mrb[2].mxu1  ;;  %v411_v20 = vmul.f32 %v343_v10, %v343_v10  ;;  %v415_v21 = vmul.f32 %v353_v11, %v353_v11 }
  0xf6   : > { %363 = vst [vmem:[#allocation4 + $0x10] sm:$0xff] %v345_v12  ;;  %v368_v16 = vadd.f32 %v345_v12, %v341_v8  ;;  %v412_v17 = vmul.f32 %v345_v12, %v345_v12  ;;  %v347_v18 = vpop.f32.mrb[3].mxu0  ;;  %v356_v19 = vpop.f32.mrb[3].mxu1 }
  0xf7   : > { %364 = vst [vmem:[#allocation4 + $0x18] sm:$0xff] %v347_v18  ;;  %v376_v22 = vadd.f32 %v347_v18, %v343_v10  ;;  %v413_v23 = vmul.f32 %v347_v18, %v347_v18 }
  0xf8   : > { %v369_v24 = vadd.f32 %v368_v16, %v351_v9  ;;  %v416_v25 = vadd.f32 %v412_v17, %v410_v14 }
  0xf9   : > { %v377_v26 = vadd.f32 %v376_v22, %v353_v11  ;;  %v424_v27 = vadd.f32 %v413_v23, %v411_v20 }
  0xfa   : > { %v370_v28 = vrot.slane %v369_v24, 4  ;;  %v417_v29 = vadd.f32 %v416_v25, %v414_v15 }
  0xfb   : > { %v378_v30 = vrot.slane %v377_v26, 4  ;;  %v425_v31 = vadd.f32 %v424_v27, %v415_v21 }
  0xfc   : > { %v371_v32 = vadd.f32 %v370_v28, %v369_v24  ;;  %v418_v33 = vrot.slane %v417_v29, 4 }
  0xfd   : > { %v379_v34 = vadd.f32 %v378_v30, %v377_v26  ;;  %v426_v38 = vrot.slane %v425_v31, 4 }
  0xfe   : > { %v372_v39 = vrot.slane %v371_v32, 2  ;;  %v419_v40 = vadd.f32 %v418_v33, %v417_v29 }
  0xff   : > { %v380_v41 = vrot.slane %v379_v34, 2  ;;  %v427_v42 = vadd.f32 %v426_v38, %v425_v31 }
 0x100   : > { %v373_v43 = vadd.f32 %v372_v39, %v371_v32  ;;  %v420_v44 = vrot.slane %v419_v40, 2 }
 0x101   : > { %v381_v45 = vadd.f32 %v380_v41, %v379_v34  ;;  %v428_v48 = vrot.slane %v427_v42, 2 }
 0x102   : > { %v374_v49 = vrot.slane %v373_v43, 1  ;;  %v421_v50 = vadd.f32 %v420_v44, %v419_v40 }
 0x103   : > { %v382_v51 = vrot.slane %v381_v45, 1  ;;  %v429_v52 = vadd.f32 %v428_v48, %v427_v42 }
 0x104   : > { %v375_v53 = vadd.f32 %v374_v49, %v373_v43  ;;  %v422_v54 = vrot.slane %v421_v50, 1 }
 0x105   : > { %v383_v55 = vadd.f32 %v382_v51, %v381_v45  ;;  %v430_v57 = vrot.slane %v429_v52, 1 }
 0x106   : > { %v423_v58 = vadd.f32 %v422_v54, %v421_v50 }
 0x107   : > { %v386_v59 = vcombine.low %v375_v53, %v383_v55  ;;  %v431_v60 = vadd.f32 %v430_v57, %v429_v52 }
 0x109   : > { %v393_v61 = vrot.slane %v386_v59, %v392_v56  ;;  %v434_v62 = vcombine.low %v423_v58, %v431_v60 }
 0x10b   : > { %v400_v0 = vrot.slane %v393_v61, %v392_v56  ;;  %v441_v1 = vrot.slane %v434_v62, %v392_v56 }
 0x10d   : > { %v402_v3 = vadd.f32 %v400_v0, %v367_v63  ;;  %v448_v4 = vrot.slane %v441_v1, %v392_v56 }
 0x10f   : > { %407 = vst.msk [vmem:[#allocation2] ss:$2 sm:$0x3] %vm405_vm1, %v402_v3  ;;  %v450_v5 = vadd.f32 %v448_v4, %v409_v2 }
 0x111   : > { %451 = vst.msk [vmem:[#allocation2 + $0x1] ss:$2 sm:$0x3] %vm405_vm1, %v450_v5 }
 0x112 PF: > { %453 = sbr.rel (!%p255_p4) target bundleno = 307 (0x133), region = 52  ;;  %v466_v14 = vlaneseq (%p255_p4)  ;;  %v464_v15 = vld [vmem:[%s902_s2] sm:$0x3] (%p255_p4) }
 0x113   : > { %v471_v18 = vld [vmem:[%s903_s3] sm:$0x3] (%p255_p4) }
 0x114   : > { %vm468_vm2 = vcmp.lt.s32.totalorder (%p255_p4), %v466_v14, 256 }
 0x116   : > { %v454_v6 = vld [vmem:[#allocation2] ss:$2 sm:$0x3] (%p255_p4) }
 0x117   : > { %v455_v8 = vmul.f32 (%p255_p4), 0.05, %v454_v6 }
 0x118   : > { %v457_v7 = vld [vmem:[#allocation2 + $0x1] ss:$2 sm:$0x3] (%p255_p4) }
 0x119   : > { %v458_v9 = vmul.f32 0.05, %v457_v7  ;;  %v459_v10 = vmul.f32 %v455_v8, %v455_v8 }
 0x11b   : > { %v460_v11 = vsub.f32 %v458_v9, %v459_v10 }
 0x11d   : > { %v461_v12 = vmax.f32 %v460_v11, 0.0 }
 0x11f   : > { %v462_v13 = vadd.f32 1e-05, %v461_v12 }
 0x121   : > { %760 = vrsqrt.f32 %v462_v13 }
 0x12b   : > { %v761_v16 = vpop.eup %760 }
 0x12c   : > { %v465_v17 = vmul.f32 %v761_v16, %v464_v15 }
 0x12e   : > { %470 = vst.msk [vmem:[#allocation3] ss:$2 sm:$0x3] %vm468_vm2, %v465_v17  ;;  %v472_v19 = vmul.f32 %v465_v17, %v455_v8 }
 0x130   : > { %v473_v20 = vsub.f32 %v471_v18, %v472_v19 }
 0x132   : > { %475 = vst.msk [vmem:[#allocation3 + $0x1] ss:$2 sm:$0x3] %vm468_vm2, %v473_v20 }
 0x133 PF: > { %p696_p6 = scmp.ne.s32.totalorder %s788_s18, 1 }
 0x134   : > { %v491_v21 = vlaneseq (!%p696_p6)  ;;  %v801_v22 = vmov (!%p696_p6), 0.0|0.0   ;;  %vm802_vm3 = vmmov (!%p696_p6), 0   ;;  %v803_v23 = vmov (!%p696_p6), 0.0   ;;  %v483_v27 = vld [vmem:[#allocation4] sm:$0xff] (!%p696_p6)  ;;  %v484_v30 = vld [vmem:[#allocation4 + $0x8] sm:$0xff] (!%p696_p6)  ;;  %v485_v31 = vld [vmem:[#allocation4 + $0x10] sm:$0xff] (!%p696_p6) }
 0x135   : > { %479 = sbr.rel (%p696_p6) target bundleno = 566 (0x236), region = 56  ;;  %715 = vmatprep.subr.bf16.mxu0 (!%p696_p6), %v801_v22  ;;  %712 = vmatprep.mubr.msk.f32.mxu0 (!%p696_p6), %vm802_vm3, %v803_v23  ;;  %v489_v25 = vld [vmem:[#allocation3] ss:$2 sm:$0x3] (!%p696_p6)  ;;  %v487_v37 = vld [vmem:[#allocation4 + $0x20] sm:$0xff] (!%p696_p6)  ;;  %v488_v51 = vld [vmem:[#allocation4 + $0x28] sm:$0xff] (!%p696_p6) }
 0x136   : > { %v492_v24 = vshrl.u32 (!%p696_p6), %v491_v21, 7  ;;  %v486_v32 = vld [vmem:[#allocation4 + $0x18] sm:$0xff] (!%p696_p6)  ;;  %vm615_vm4 = vcmask (!%p696_p6), 188416  }
 0x137   : > { %v544_v6 = vld [vmem:[%s904_s4] sm:$0x1] (!%p696_p6) }
 0x138   : > { %v493_v28 = vsub.s32 (!%p696_p6), 0, %v492_v24  ;;  %v497_v29 = vsub.s32 (!%p696_p6), 1, %v492_v24 }
 0x139   : > { %v508_v26 = vld [vmem:[#allocation3 + $0x1] ss:$2 sm:$0x3] (!%p696_p6) }
 0x13a   : > { %v494_v33 = vrot.slane (!%p696_p6), %v489_v25, %v493_v28  ;;  %v498_v34 = vrot.slane (!%p696_p6), %v489_v25, %v497_v29  ;;  %v513_v35 = vrot.slane (!%p696_p6), %v508_v26, %v493_v28  ;;  %v517_v36 = vrot.slane (!%p696_p6), %v508_v26, %v497_v29 }
 0x13c   : > { %v501_v38 = vmul.f32 %v494_v33, %v483_v27  ;;  %v502_v39 = vmul.f32 %v498_v34, %v484_v30  ;;  %v503_v40 = vmul.f32 %v494_v33, %v485_v31  ;;  %v504_v41 = vmul.f32 %v498_v34, %v486_v32 }
 0x13d   : > { %v505_v42 = vmul.f32 %v494_v33, %v487_v37  ;;  %v506_v52 = vmul.f32 %v498_v34, %v488_v51 }
 0x13e   : > { %v520_v43 = vadd.f32 %v513_v35, %v501_v38  ;;  %v521_v44 = vadd.f32 %v517_v36, %v502_v39  ;;  %v522_v45 = vadd.f32 %v513_v35, %v503_v40  ;;  %v523_v47 = vadd.f32 %v517_v36, %v504_v41 }
 0x13f   : > { %v524_v46 = vadd.f32 %v513_v35, %v505_v42  ;;  %v525_v53 = vadd.f32 %v517_v36, %v506_v52 }
 0x140   : > { %v526_v48 = vmul.f32 0.5, %v520_v43  ;;  %v527_v49 = vmul.f32 0.5, %v522_v45  ;;  %762 = vtanh.f32 %v521_v44 }
 0x141   : > { %v528_v50 = vmul.f32 0.5, %v524_v46 }
 0x142   : > { %764 = vtanh.f32 %v526_v48 }
 0x143   : > { %766 = vtanh.f32 %v527_v49 }
 0x144   : > { %768 = vtanh.f32 %v523_v47 }
 0x145   : > { %770 = vtanh.f32 %v528_v50 }
 0x146   : > { %772 = vtanh.f32 %v525_v53 }
 0x14a   : > { %v763_v54 = vpop.eup %762 }
 0x14c   : > { %v765_v55 = vpop.eup %764 }
 0x14d   : > { %v767_v56 = vpop.eup %766  ;;  %v532_v57 = vadd.f32 1.0, %v765_v55 }
 0x14e   : > { %v769_v58 = vpop.eup %768  ;;  %v533_v59 = vadd.f32 1.0, %v767_v56 }
 0x14f   : > { %v771_v60 = vpop.eup %770  ;;  %v535_v61 = vmul.f32 0.5, %v532_v57 }
 0x150   : > { %v536_v62 = vmul.f32 0.5, %v533_v59  ;;  %v534_v1 = vadd.f32 1.0, %v771_v60  ;;  %v773_v4 = vpop.eup %772 }
 0x151   : > { %v541_v63 = vmul.f32 %v763_v54, %v535_v61 }
 0x152   : > { %v542_v0 = vmul.f32 %v769_v58, %v536_v62  ;;  %v537_v3 = vmul.f32 0.5, %v534_v1 }
 0x154   : > { %v716_v2 = vpack.c.bf16 %v542_v0, %v541_v63  ;;  %v543_v5 = vmul.f32 %v773_v4, %v537_v3 }
 0x156   : > { %717 = vmatpush3.bf16.xpose.msra.mxu0 %v716_v2 }
 0x157   : > { %710 = vmatprep.subr.mxu0 %v803_v23 }
 0x15e   : > { %711 = vmatpush3.xpose.msra.mxu0 %v543_v5 }
 0x161   : > { %713 = vmatmul.mubr.f32.vlgmr.msra.gmra.mrb[0].mxu0 %v544_v6 }
 0x234   : > { %v611_v7 = vpop.f32.mrb[0].mxu0 }
 0x235   : > { %616 = vst.msk [vmem:[%s905_s5] sm:$0x1] %vm615_vm4, %v611_v7  ;;  %v714_v8 = vpop.f32.mrb[1].mxu0 }
 0x236 PF: > { %s15_s20 = sadd.s32 1, %s796_s20   ;;  %s906_s18 = smov %s792_s19 }
 0x237   : > { %p12_p7 = scmp.ge.s32.totalorder %s15_s20, 4   ;;  %s907_s19 = smov %s909_s21 }
 0x239   :  { %14 = sbr.rel (!%p12_p7) target bundleno = 2 (0x2), region = 92 }

</bundles_post_ra>
